<compile_context>
chip_gen: v7x
topology: tpu7x:2x2x1
jax: 0.10.0
libtpu: 0.0.40
codegen_flags: <defaults>
</compile_context>

<pallas_src>
import functools
import math

import numpy as np
import jax
import jax.numpy as jnp
from jax.experimental import pallas as pl
from jax.experimental.pallas import tpu as pltpu


# --------------------------------------------------------------------------
# Hardware-aware helpers
# --------------------------------------------------------------------------

@functools.lru_cache(maxsize=None)
def _vmem_budget():
    """Usable VMEM bytes per core (leave ~25% headroom for Mosaic scratch)."""
    cap = 64 * 1024 * 1024  # assume the smallest generation (v7x) if the query fails
    try:
        info = pltpu.get_tpu_info()
        cap = int(getattr(info, "vmem_capacity_bytes", cap))
    except Exception:
        pass
    return max((cap * 3) // 4, 32 * 1024 * 1024)


def _pick_tile(dim, target, align=128):
    """Largest divisor of `dim` that is <= target and a multiple of `align`
    (falling back to multiples of 8, then the full dim)."""
    if dim <= target:
        return dim
    for a in (align, 8):
        t = (target // a) * a
        while t >= a:
            if dim % t == 0:
                return t
            t -= a
    return dim


# --------------------------------------------------------------------------
# Kernel 1: plain GEMM + bias (+ optional GELU) — used for the fused QKV projection
# --------------------------------------------------------------------------

def _matmul_bias_act_kernel(x_ref, w_ref, b_ref, o_ref, acc_ref, *, activation):
    k = pl.program_id(2)

    @pl.when(k == 0)
    def _():
        acc_ref[...] = jnp.zeros_like(acc_ref)

    acc_ref[...] += jnp.dot(x_ref[...].astype(w_ref.dtype), w_ref[...],
                            preferred_element_type=jnp.float32)

    @pl.when(k == pl.num_programs(2) - 1)
    def _():
        y = acc_ref[...] + b_ref[...]
        if activation == "gelu":
            c = math.sqrt(2.0 / math.pi)
            y = 0.5 * y * (1.0 + jnp.tanh(c * (y + 0.044715 * y * y * y)))
        o_ref[...] = y.astype(o_ref.dtype)


def linear_bias_act(x, w, b, activation=None, out_dtype=None):
    """y = act(x @ w + b).  x: (M, K), w: (K, N), b: (1, N) -> (M, N)."""
    M, K = x.shape
    N = w.shape[1]
    out_dtype = out_dtype if out_dtype is not None else x.dtype
    out_isz = np.dtype(out_dtype).itemsize
    budget = _vmem_budget()

    tk = _pick_tile(K, 1024, 128)
    tn = _pick_tile(N, 512, 128)
    # double-buffered x + acc + double-buffered out per M row; weights/bias fixed
    per_row = 2 * tk * x.dtype.itemsize + 4 * tn + 2 * tn * out_isz
    fixed = 2 * tk * tn * w.dtype.itemsize + 2 * tn * 4
    tm_cap = max(8, int(budget * 0.6 - fixed) // per_row)
    tm = _pick_tile(M, min(M, tm_cap), 8)
    # keep >=2 parallel grid steps when possible (v7x megacore)
    if (M // tm) * (N // tn) == 1 and N >= 256:
        tn = _pick_tile(N, max(128, N // 2), 128)

    grid = (M // tm, N // tn, K // tk)
    cost = pl.CostEstimate(
        flops=2 * M * N * K + 4 * M * N,
        transcendentals=(M * N if activation == "gelu" else 0),
        bytes_accessed=(M * K * x.dtype.itemsize + K * N * w.dtype.itemsize
                        + N * 4 + M * N * out_isz))
    return pl.pallas_call(
        functools.partial(_matmul_bias_act_kernel, activation=activation),
        out_shape=jax.ShapeDtypeStruct((M, N), out_dtype),
        grid=grid,
        in_specs=[pl.BlockSpec((tm, tk), lambda i, j, k: (i, k)),
                  pl.BlockSpec((tk, tn), lambda i, j, k: (k, j)),
                  pl.BlockSpec((1, tn), lambda i, j, k: (0, j))],
        out_specs=pl.BlockSpec((tm, tn), lambda i, j, k: (i, j)),
        scratch_shapes=[pltpu.VMEM((tm, tn), jnp.float32)],
        compiler_params=pltpu.CompilerParams(
            dimension_semantics=("parallel", "parallel", "arbitrary"),
            vmem_limit_bytes=_vmem_budget()),
        cost_estimate=cost,
    )(x, w, b)


# --------------------------------------------------------------------------
# Kernel 2: multi-head attention (mask DMA'd once per q-tile, several heads / step)
# --------------------------------------------------------------------------

def _attention_kernel(mask_ref, kb_ref, q_ref, k_ref, v_ref, o_ref):
    q = q_ref[0]          # (hpb, tq, dh)  -- 1/sqrt(dh) folded into the Q weights
    k = k_ref[0]          # (hpb, L, dh)
    v = v_ref[0]          # (hpb, L, dh)
    s = jax.lax.dot_general(q, k, (((2,), (2,)), ((0,), (0,))),
                            preferred_element_type=jnp.float32)   # (hpb, tq, L)
    s = s + mask_ref[...] + kb_ref[...]                           # additive masks (f32)
    m = jnp.maximum(jnp.max(s, axis=-1, keepdims=True), -1e30)    # guard all -inf rows
    p = jnp.exp(s - m)
    denom = jnp.maximum(jnp.sum(p, axis=-1, keepdims=True), 1e-30)
    p = p * pl.reciprocal(denom, approx=True)                     # divide on the EUP
    ctx = jax.lax.dot_general(p.astype(v.dtype), v, (((2,), (1,)), ((0,), (0,))),
                              preferred_element_type=jnp.float32)
    o_ref[0] = ctx.astype(o_ref.dtype)


def multi_head_attention(qkv4, mask, key_bias, *, num_heads):
    """qkv4: (B, 3*nh, L, dh) packed [Q heads | K heads | V heads] (Q pre-scaled).
    mask: (1, L, L) shared additive mask; key_bias: (B, 1, L) per-batch additive bias.
    Returns ctx: (B, nh, L, dh)."""
    B, three_nh, L, dh = qkv4.shape
    nh = num_heads
    assert three_nh == 3 * nh
    budget = _vmem_budget()
    tq = _pick_tile(L, 256, 8)
    # heads per grid step (amortize K/V DMA + per-step overhead when dh is narrow)
    hpb = 1
    for cand in (4, 2):
        if nh % cand:
            continue
        need = cand * (4 * tq * L * 4                              # score/prob temporaries
                       + 4 * L * dh * qkv4.dtype.itemsize          # K/V double-buffered
                       + 4 * tq * dh * qkv4.dtype.itemsize)        # Q/out double-buffered
        if need <= budget // 3:
            hpb = cand
            break
    grid = (L // tq, B, nh // hpb)                                 # mask held across (b, h)

    cost = pl.CostEstimate(
        flops=4 * B * nh * L * L * dh,
        transcendentals=B * nh * L * L,
        bytes_accessed=(4 * B * nh * L * dh * qkv4.dtype.itemsize
                        + L * L * 4 + B * L * 4))
    return pl.pallas_call(
        _attention_kernel,
        out_shape=jax.ShapeDtypeStruct((B, nh, L, dh), qkv4.dtype),
        grid=grid,
        in_specs=[
            pl.BlockSpec((1, tq, L), lambda qi, b, h: (0, qi, 0)),                  # mask
            pl.BlockSpec((1, 1, L), lambda qi, b, h: (b, 0, 0)),                    # key bias
            pl.BlockSpec((1, hpb, tq, dh), lambda qi, b, h: (b, h, qi, 0)),         # Q heads
            pl.BlockSpec((1, hpb, L, dh), lambda qi, b, h: (b, nh // hpb + h, 0, 0)),      # K
            pl.BlockSpec((1, hpb, L, dh), lambda qi, b, h: (b, 2 * (nh // hpb) + h, 0, 0)),# V
        ],
        out_specs=pl.BlockSpec((1, hpb, tq, dh), lambda qi, b, h: (b, h, qi, 0)),
        compiler_params=pltpu.CompilerParams(
            dimension_semantics=("parallel", "parallel", "parallel"),
            vmem_limit_bytes=_vmem_budget()),
        cost_estimate=cost,
    )(mask, key_bias, qkv4, qkv4, qkv4)


# --------------------------------------------------------------------------
# Kernel 3: output projection reading ctx head-major, fused bias+residual+LayerNorm
#           (reduction over heads; no ctx relayout round trip through HBM)
# --------------------------------------------------------------------------

def _attn_out_res_ln_kernel(ctx_ref, w_ref, b_ref, res_ref, g_ref, bt_ref,
                            of_ref, ob_ref, acc_ref, *, eps):
    h = pl.program_id(2)

    @pl.when(h == 0)
    def _():
        acc_ref[...] = jnp.zeros_like(acc_ref)

    acc_ref[...] += jnp.dot(ctx_ref[0, 0].astype(w_ref.dtype), w_ref[...],
                            preferred_element_type=jnp.float32)

    @pl.when(h == pl.num_programs(2) - 1)
    def _():
        y = acc_ref[...] + b_ref[...] + res_ref[0].astype(jnp.float32)
        mu = jnp.mean(y, axis=-1, keepdims=True)
        var = jnp.mean((y - mu) ** 2, axis=-1, keepdims=True)
        out = (y - mu) * jax.lax.rsqrt(var + eps) * g_ref[...] + bt_ref[...]
        of_ref[0] = out
        ob_ref[0] = out.astype(ob_ref.dtype)


def attn_out_residual_layernorm(ctx4, wo, bo, res, gamma, beta, eps=1e-12):
    """LayerNorm(ctx @ wo + bo + res) with ctx in (B, nh, L, dh) (head-merge in-grid).
    Returns (f32 residual stream, bf16 activation copy), both (B, L, H)."""
    B, nh, L, dh = ctx4.shape
    H = wo.shape[1]
    budget = _vmem_budget()
    per_row = (2 * dh * ctx4.dtype.itemsize + 2 * H * 4 + H * 4 + 2 * H * 4 + 2 * H * 2)
    fixed = 2 * dh * H * wo.dtype.itemsize + 8 * H * 4
    tl_cap = max(8, int(budget * 0.5 - fixed) // per_row)
    tl = _pick_tile(L, min(L, tl_cap), 8)
    grid = (B, L // tl, nh)

    cost = pl.CostEstimate(
        flops=2 * B * L * H * H + 12 * B * L * H,
        transcendentals=B * L,
        bytes_accessed=(B * L * H * ctx4.dtype.itemsize + H * H * wo.dtype.itemsize
                        + 3 * B * L * H * 4 + B * L * H * 2 + 6 * H * 4))
    return pl.pallas_call(
        functools.partial(_attn_out_res_ln_kernel, eps=eps),
        out_shape=(jax.ShapeDtypeStruct((B, L, H), jnp.float32),
                   jax.ShapeDtypeStruct((B, L, H), jnp.bfloat16)),
        grid=grid,
        in_specs=[
            pl.BlockSpec((1, 1, tl, dh), lambda b, li, h: (b, h, li, 0)),   # ctx head slice
            pl.BlockSpec((dh, H), lambda b, li, h: (h, 0)),                 # wo rows for head
            pl.BlockSpec((1, H), lambda b, li, h: (0, 0)),                  # bo
            pl.BlockSpec((1, tl, H), lambda b, li, h: (b, li, 0)),          # residual (f32)
            pl.BlockSpec((1, H), lambda b, li, h: (0, 0)),                  # gamma
            pl.BlockSpec((1, H), lambda b, li, h: (0, 0)),                  # beta
        ],
        out_specs=[pl.BlockSpec((1, tl, H), lambda b, li, h: (b, li, 0)),
                   pl.BlockSpec((1, tl, H), lambda b, li, h: (b, li, 0))],
        scratch_shapes=[pltpu.VMEM((tl, H), jnp.float32)],
        compiler_params=pltpu.CompilerParams(
            dimension_semantics=("parallel", "parallel", "arbitrary"),
            vmem_limit_bytes=_vmem_budget()),
        cost_estimate=cost,
    )(ctx4, wo, bo, res, gamma, beta)


# --------------------------------------------------------------------------
# Kernel 4: fused FFN (up-proj + GELU + down-proj) + bias + residual + LayerNorm
#           (the (M, 4H) intermediate never leaves VMEM)
# --------------------------------------------------------------------------

def _ffn_res_ln_kernel(x_ref, wi_ref, bi_ref, wf_ref, bf_ref, res_ref, g_ref, bt_ref,
                       of_ref, ob_ref, acc_ref, *, eps):
    k = pl.program_id(1)

    @pl.when(k == 0)
    def _():
        acc_ref[...] = jnp.zeros_like(acc_ref)

    up = jnp.dot(x_ref[...].astype(wi_ref.dtype), wi_ref[...],
                 preferred_element_type=jnp.float32) + bi_ref[...]
    c = math.sqrt(2.0 / math.pi)
    up = 0.5 * up * (1.0 + jnp.tanh(c * (up + 0.044715 * up * up * up)))
    acc_ref[...] += jnp.dot(up.astype(wf_ref.dtype), wf_ref[...],
                            preferred_element_type=jnp.float32)

    @pl.when(k == pl.num_programs(1) - 1)
    def _():
        y = acc_ref[...] + bf_ref[...] + res_ref[...].astype(jnp.float32)
        mu = jnp.mean(y, axis=-1, keepdims=True)
        var = jnp.mean((y - mu) ** 2, axis=-1, keepdims=True)
        out = (y - mu) * jax.lax.rsqrt(var + eps) * g_ref[...] + bt_ref[...]
        of_ref[...] = out
        ob_ref[...] = out.astype(ob_ref.dtype)


def ffn_residual_layernorm(x, wi, bi, wf, bf2, res, gamma, beta, eps=1e-12):
    """LayerNorm(gelu(x @ wi + bi) @ wf + bf + res).  x: (M, H) bf16, res: (M, H) f32.
    Returns (f32 residual stream, bf16 activation copy), both (M, H)."""
    M, H = x.shape
    Idim = wi.shape[1]
    budget = _vmem_budget()
    ti = _pick_tile(Idim, 512, 128)
    per_row = (2 * H * x.dtype.itemsize        # x double-buffered
               + 2 * H * 4                     # residual (f32) double-buffered
               + H * 4                         # f32 accumulator
               + 2 * H * 4 + 2 * H * 2         # f32 + bf16 outputs double-buffered
               + 3 * ti * 4)                   # (tm, ti) GELU temporaries
    fixed = (2 * H * ti * wi.dtype.itemsize + 2 * ti * H * wf.dtype.itemsize
             + 2 * ti * 4 + 8 * H * 4)
    tm_cap = max(8, int(budget * 0.6 - fixed) // per_row)
    tm = _pick_tile(M, min(M, tm_cap), 8)
    grid = (M // tm, Idim // ti)

    cost = pl.CostEstimate(
        flops=4 * M * H * Idim + 12 * M * H,
        transcendentals=M * Idim + M,
        bytes_accessed=(M * H * x.dtype.itemsize + 2 * H * Idim * wi.dtype.itemsize
                        + 3 * M * H * 4 + M * H * 2 + (Idim + 7 * H) * 4))
    return pl.pallas_call(
        functools.partial(_ffn_res_ln_kernel, eps=eps),
        out_shape=(jax.ShapeDtypeStruct((M, H), jnp.float32),
                   jax.ShapeDtypeStruct((M, H), jnp.bfloat16)),
        grid=grid,
        in_specs=[
            pl.BlockSpec((tm, H), lambda i, k: (i, 0)),     # x (fetched once per M-tile)
            pl.BlockSpec((H, ti), lambda i, k: (0, k)),     # wi slice
            pl.BlockSpec((1, ti), lambda i, k: (0, k)),     # bi slice
            pl.BlockSpec((ti, H), lambda i, k: (k, 0)),     # wf slice
            pl.BlockSpec((1, H), lambda i, k: (0, 0)),      # bf
            pl.BlockSpec((tm, H), lambda i, k: (i, 0)),     # residual (f32)
            pl.BlockSpec((1, H), lambda i, k: (0, 0)),      # gamma
            pl.BlockSpec((1, H), lambda i, k: (0, 0)),      # beta
        ],
        out_specs=[pl.BlockSpec((tm, H), lambda i, k: (i, 0)),
                   pl.BlockSpec((tm, H), lambda i, k: (i, 0))],
        scratch_shapes=[pltpu.VMEM((tm, H), jnp.float32)],
        compiler_params=pltpu.CompilerParams(
            dimension_semantics=("parallel", "arbitrary"),
            vmem_limit_bytes=_vmem_budget()),
        cost_estimate=cost,
    )(x, wi, bi, wf, bf2, res, gamma, beta)


# --------------------------------------------------------------------------
# BertEncoderAsDecoder forward (glue + kernel calls)
# --------------------------------------------------------------------------

def build_masks(tgt_mask, num_mem, num_tgt, B, memory_key_padding_mask=None):
    """Shared (1, L, L) additive mask + per-batch (B, 1, L) key-padding bias.
    (Avoids materializing the (B, L, L) broadcast the PyTorch code builds.)"""
    f32 = jnp.float32
    neg_inf = float("-inf")
    top_left = jnp.zeros((num_mem, num_mem), f32)
    top_right = jnp.full((num_mem, num_tgt), neg_inf, f32)
    bottom_left = jnp.zeros((num_tgt, num_mem), f32)
    left = jnp.concatenate([top_left, bottom_left], axis=0)
    right = jnp.concatenate([top_right, tgt_mask.astype(f32)], axis=0)
    mask = jnp.concatenate([left, right], axis=1)[None]               # (1, L, L)
    L = num_mem + num_tgt
    if memory_key_padding_mask is None:
        key_bias = jnp.zeros((B, 1, L), f32)
    else:
        pad = jnp.where(memory_key_padding_mask, neg_inf, 0.0).astype(f32)   # (B, num_mem)
        key_bias = jnp.concatenate([pad, jnp.zeros((B, num_tgt), f32)], axis=1)[:, None, :]
    return mask, key_bias


def bert_encoder_as_decoder_forward(tgt, memory, tgt_mask, params,
                                    memory_key_padding_mask=None):
    """tgt: (num_tgt, B, H), memory: (num_mem, B, H), tgt_mask: (num_tgt, num_tgt)."""
    # TODO(synk): tgt_bi_valid_mask scatter path and encoder_history_states
    #             (incremental decoding) path are not implemented.
    num_tgt, B, H = tgt.shape
    num_mem = memory.shape[0]
    L = num_mem + num_tgt
    nh = params["num_heads"]
    dh = H // nh

    hidden = jnp.concatenate([jnp.transpose(memory, (1, 0, 2)),
                              jnp.transpose(tgt, (1, 0, 2))], axis=1).astype(jnp.float32)
    mask, key_bias = build_masks(tgt_mask, num_mem, num_tgt, B, memory_key_padding_mask)

    h_res = hidden                          # (B, L, H) f32 residual stream
    h_act = hidden.astype(jnp.bfloat16)     # bf16 activations feeding the GEMMs
    for lp in params["layers"]:
        # fused QKV projection (1/sqrt(dh) folded into Q); bf16 feeds attention directly
        qkv = linear_bias_act(h_act.reshape(B * L, H), lp["wqkv"], lp["bqkv"],
                              out_dtype=lp["wqkv"].dtype)
        # single relayout so each head is addressable through BlockSpec
        qkv4 = qkv.reshape(B, L, 3 * nh, dh).transpose(0, 2, 1, 3)       # (B, 3nh, L, dh)
        ctx4 = multi_head_attention(qkv4, mask, key_bias, num_heads=nh)  # (B, nh, L, dh)
        # output projection consumes ctx head-major; bias + residual + LN fused
        h_res, h_act = attn_out_residual_layernorm(ctx4, lp["wo"], lp["bo"], h_res,
                                                   lp["ln1_g"], lp["ln1_b"])
        # fused FFN (up + GELU + down) + bias + residual + LN
        hr2, ha2 = ffn_residual_layernorm(h_act.reshape(B * L, H), lp["wi"], lp["bi"],
                                          lp["wf"], lp["bf"], h_res.reshape(B * L, H),
                                          lp["ln2_g"], lp["ln2_b"])
        h_res = hr2.reshape(B, L, H)
        h_act = ha2.reshape(B, L, H)

    out = h_res[:, num_mem:]                  # == result[0][:, num_memory:]
    return jnp.transpose(out, (1, 0, 2))      # == .transpose(0, 1)


# --------------------------------------------------------------------------
# Parameter prep (QKV fusion, scale folding, bf16 weight cast)
# --------------------------------------------------------------------------

def prepare_params(raw, compute_dtype=jnp.bfloat16):
    nh = raw["num_heads"]
    layers = []
    for lp in raw["layers"]:
        H = lp["wq"].shape[0]
        scale = 1.0 / math.sqrt(H // nh)
        wqkv = jnp.concatenate([lp["wq"] * scale, lp["wk"], lp["wv"]], axis=1)
        bqkv = jnp.concatenate([lp["bq"] * scale, lp["bk"], lp["bv"]], axis=1)
        layers.append(dict(
            wqkv=wqkv.astype(compute_dtype), bqkv=bqkv.astype(jnp.float32),
            wo=lp["wo"].astype(compute_dtype), bo=lp["bo"].astype(jnp.float32),
            wi=lp["wi"].astype(compute_dtype), bi=lp["bi"].astype(jnp.float32),
            wf=lp["wf"].astype(compute_dtype), bf=lp["bf"].astype(jnp.float32),
            ln1_g=lp["ln1_g"].astype(jnp.float32), ln1_b=lp["ln1_b"].astype(jnp.float32),
            ln2_g=lp["ln2_g"].astype(jnp.float32), ln2_b=lp["ln2_b"].astype(jnp.float32),
        ))
    return {"num_heads": nh, "layers": layers}


def init_raw_params(key, H, nh, inter, num_layers):
    layers = []
    std = 0.02
    for lkey in jax.random.split(key, num_layers):
        ks = jax.random.split(lkey, 12)
        layers.append(dict(
            wq=jax.random.normal(ks[0], (H, H), jnp.float32) * std,
            bq=jax.random.normal(ks[1], (1, H), jnp.float32) * std,
            wk=jax.random.normal(ks[2], (H, H), jnp.float32) * std,
            bk=jax.random.normal(ks[3], (1, H), jnp.float32) * std,
            wv=jax.random.normal(ks[4], (H, H), jnp.float32) * std,
            bv=jax.random.normal(ks[5], (1, H), jnp.float32) * std,
            wo=jax.random.normal(ks[6], (H, H), jnp.float32) * std,
            bo=jax.random.normal(ks[7], (1, H), jnp.float32) * std,
            wi=jax.random.normal(ks[8], (H, inter), jnp.float32) * std,
            bi=jax.random.normal(ks[9], (1, inter), jnp.float32) * std,
            wf=jax.random.normal(ks[10], (inter, H), jnp.float32) * std,
            bf=jax.random.normal(ks[11], (1, H), jnp.float32) * std,
            ln1_g=jnp.ones((1, H), jnp.float32),
            ln1_b=jnp.zeros((1, H), jnp.float32),
            ln2_g=jnp.ones((1, H), jnp.float32),
            ln2_b=jnp.zeros((1, H), jnp.float32),
        ))
    return {"num_heads": nh, "layers": layers}


# --------------------------------------------------------------------------
# Pure-JAX reference (same bf16-matmul / f32-accumulate math) for verification
# --------------------------------------------------------------------------

def reference_forward(tgt, memory, tgt_mask, params, memory_key_padding_mask=None):
    num_tgt, B, H = tgt.shape
    num_mem = memory.shape[0]
    L = num_mem + num_tgt
    nh = params["num_heads"]
    dh = H // nh
    hidden = jnp.concatenate([jnp.transpose(memory, (1, 0, 2)),
                              jnp.transpose(tgt, (1, 0, 2))], axis=1)
    mask, key_bias = build_masks(tgt_mask, num_mem, num_tgt, B, memory_key_padding_mask)
    add_mask = mask + key_bias                     # (B, L, L)

    def ln(x, g, b, eps=1e-12):
        mu = jnp.mean(x, axis=-1, keepdims=True)
        var = jnp.mean((x - mu) ** 2, axis=-1, keepdims=True)
        return (x - mu) * jax.lax.rsqrt(var + eps) * g[0] + b[0]

    h2 = hidden.reshape(B * L, H)
    for lp in params["layers"]:
        cdt = lp["wqkv"].dtype
        qkv = (jnp.dot(h2.astype(cdt), lp["wqkv"], preferred_element_type=jnp.float32)
               + lp["bqkv"][0]).astype(cdt)
        qkv4 = qkv.reshape(B, L, 3 * nh, dh).transpose(0, 2, 1, 3)
        q, k, v = qkv4[:, :nh], qkv4[:, nh:2 * nh], qkv4[:, 2 * nh:]
        s = jnp.einsum("bhqd,bhkd->bhqk", q, k,
                       preferred_element_type=jnp.float32) + add_mask[:, None]
        s = s - jnp.max(s, axis=-1, keepdims=True)
        p = jnp.exp(s)
        p = p / jnp.sum(p, axis=-1, keepdims=True)
        ctx = jnp.einsum("bhqk,bhkd->bhqd", p.astype(cdt), v,
                         preferred_element_type=jnp.float32).astype(cdt)
        ctx2 = ctx.transpose(0, 2, 1, 3).reshape(B * L, H)
        attn = jnp.dot(ctx2, lp["wo"], preferred_element_type=jnp.float32) + lp["bo"][0]
        h2 = ln(attn + h2, lp["ln1_g"], lp["ln1_b"])
        pre = (jnp.dot(h2.astype(cdt), lp["wi"], preferred_element_type=jnp.float32)
               + lp["bi"][0])
        c = math.sqrt(2.0 / math.pi)
        inter = (0.5 * pre * (1.0 + jnp.tanh(c * (pre + 0.044715 * pre ** 3)))).astype(cdt)
        ffn = jnp.dot(inter, lp["wf"], preferred_element_type=jnp.float32) + lp["bf"][0]
        h2 = ln(ffn + h2, lp["ln2_g"], lp["ln2_b"])
    return jnp.transpose(h2.reshape(B, L, H)[:, num_mem:], (1, 0, 2))


# --------------------------------------------------------------------------

if __name__ == "__main__":
    B, H, nh, inter = 2, 32, 4, 64
    num_mem, num_tgt = 8, 8
    num_layers = 2

    key = jax.random.PRNGKey(0)
    k_tgt, k_mem, k_par = jax.random.split(key, 3)
    tgt = jax.random.normal(k_tgt, (num_tgt, B, H), jnp.float32)      # (S_tgt, B, H)
    memory = jax.random.normal(k_mem, (num_mem, B, H), jnp.float32)   # (S_mem, B, H)

    # causal tgt_mask, PyTorch convention: 0 allowed, -inf blocked, shape (num_tgt, num_tgt)
    row = jnp.arange(num_tgt)[:, None]
    col = jnp.arange(num_tgt)[None, :]
    tgt_mask = jnp.where(col <= row, 0.0, float("-inf")).astype(jnp.float32)

    raw = init_raw_params(k_par, H, nh, inter, num_layers)
    params = prepare_params(raw, compute_dtype=jnp.bfloat16)

    out = bert_encoder_as_decoder_forward(tgt, memory, tgt_mask, params)
    out = jax.block_until_ready(out)

    ref = jax.block_until_ready(reference_forward(tgt, memory, tgt_mask, params))
    assert out.shape == (num_tgt, B, H), out.shape
    max_err = float(jnp.max(jnp.abs(out - ref)))
    assert jnp.allclose(out, ref, atol=2e-2, rtol=2e-2), max_err

    print("KERNEL_OK")
</pallas_src>

<mosaic_0001>
module attributes {stable_mosaic.version = 11 : i64} {
  func.func @_matmul_bias_act_kernel(%arg0: i32, %arg1: i32, %arg2: i32, %arg3: memref<32x32xbf16, #tpu.memory_space<vmem>>, %arg4: memref<32x96xbf16, #tpu.memory_space<vmem>>, %arg5: memref<1x96xf32, #tpu.memory_space<vmem>>, %arg6: memref<32x96xbf16, #tpu.memory_space<vmem>>, %arg7: memref<32x96xf32, #tpu.memory_space<vmem>>) attributes {dimension_semantics = [#tpu.dimension_semantics<parallel>, #tpu.dimension_semantics<parallel>, #tpu.dimension_semantics<arbitrary>], iteration_bounds = array<i64: 1, 1, 1>, scalar_prefetch = 0 : i64, scratch_operands = 1 : i64, tpu.core_type = #tpu.core_type<tc>, window_params = [{transform_indices = @transform_0, window_bounds = array<i64: 32, 32>}, {transform_indices = @transform_1, window_bounds = array<i64: 32, 96>}, {transform_indices = @transform_2, window_bounds = array<i64: 1, 96>}, {transform_indices = @transform_3, window_bounds = array<i64: 32, 96>}]} {
    %c0_i32 = arith.constant 0 : i32
    %0 = arith.cmpi eq, %arg2, %c0_i32 : i32
    %1 = arith.extui %0 : i1 to i32
    %c0_i32_0 = arith.constant 0 : i32
    %2 = arith.cmpi ne, %1, %c0_i32_0 : i32
    scf.if %2 {
      %cst_10 = arith.constant 0.000000e+00 : f32
      %12 = vector.broadcast %cst_10 : f32 to vector<32x96xf32>
      %c0_11 = arith.constant 0 : index
      %c0_12 = arith.constant 0 : index
      %13 = vector.load %arg7[%c0_11, %c0_12] : memref<32x96xf32, #tpu.memory_space<vmem>>, vector<32x96xf32>
      tpu.vector_store %arg7[%c0_11, %c0_12], %12 {strides = array<i32>} : memref<32x96xf32, #tpu.memory_space<vmem>>, vector<32x96xf32>,
    } else {
    }
    %c0 = arith.constant 0 : index
    %c0_1 = arith.constant 0 : index
    %3 = vector.load %arg7[%c0, %c0_1] : memref<32x96xf32, #tpu.memory_space<vmem>>, vector<32x96xf32>
    %c0_2 = arith.constant 0 : index
    %c0_3 = arith.constant 0 : index
    %4 = vector.load %arg3[%c0_2, %c0_3] : memref<32x32xbf16, #tpu.memory_space<vmem>>, vector<32x32xbf16>
    %c0_4 = arith.constant 0 : index
    %c0_5 = arith.constant 0 : index
    %5 = vector.load %arg4[%c0_4, %c0_5] : memref<32x96xbf16, #tpu.memory_space<vmem>>, vector<32x96xbf16>
    %cst = arith.constant dense<0.000000e+00> : vector<32x96xf32>
    %6 = tpu.matmul %4, %5, %cst {dimension_numbers = #tpu.dot_dimension_numbers<[1], [0], [0], [1], [0, 0, 1, 1], [], []>} : vector<32x32xbf16>, vector<32x96xbf16>, vector<32x96xf32> -> vector<32x96xf32>
    %7 = arith.addf %3, %6 : vector<32x96xf32>
    %c0_6 = arith.constant 0 : index
    %c0_7 = arith.constant 0 : index
    %8 = vector.load %arg7[%c0_6, %c0_7] : memref<32x96xf32, #tpu.memory_space<vmem>>, vector<32x96xf32>
    tpu.vector_store %arg7[%c0_6, %c0_7], %7 {strides = array<i32>} : memref<32x96xf32, #tpu.memory_space<vmem>>, vector<32x96xf32>,
    %c0_i32_8 = arith.constant 0 : i32
    %9 = arith.cmpi eq, %arg2, %c0_i32_8 : i32
    %10 = arith.extui %9 : i1 to i32
    %c0_i32_9 = arith.constant 0 : i32
    %11 = arith.cmpi ne, %10, %c0_i32_9 : i32
    scf.if %11 {
      %c0_10 = arith.constant 0 : index
      %c0_11 = arith.constant 0 : index
      %12 = vector.load %arg7[%c0_10, %c0_11] : memref<32x96xf32, #tpu.memory_space<vmem>>, vector<32x96xf32>
      %c0_12 = arith.constant 0 : index
      %c0_13 = arith.constant 0 : index
      %13 = vector.load %arg5[%c0_12, %c0_13] : memref<1x96xf32, #tpu.memory_space<vmem>>, vector<1x96xf32>
      %14 = vector.broadcast %13 : vector<1x96xf32> to vector<32x96xf32>
      %15 = arith.addf %12, %14 : vector<32x96xf32>
      %16 = arith.truncf %15 : vector<32x96xf32> to vector<32x96xbf16>
      %c0_14 = arith.constant 0 : index
      %c0_15 = arith.constant 0 : index
      %17 = vector.load %arg6[%c0_14, %c0_15] : memref<32x96xbf16, #tpu.memory_space<vmem>>, vector<32x96xbf16>
      tpu.vector_store %arg6[%c0_14, %c0_15], %16 {strides = array<i32>} : memref<32x96xbf16, #tpu.memory_space<vmem>>, vector<32x96xbf16>,
    } else {
    }
    return
  }
  func.func @transform_0(%arg0: i32, %arg1: i32, %arg2: i32) -> (i32, i32) {
    %c0_i32 = arith.constant 0 : i32
    return %arg0, %arg2 : i32, i32
  }
  func.func @transform_1(%arg0: i32, %arg1: i32, %arg2: i32) -> (i32, i32) {
    %c0_i32 = arith.constant 0 : i32
    return %arg2, %arg1 : i32, i32
  }
  func.func @transform_2(%arg0: i32, %arg1: i32, %arg2: i32) -> (i32, i32) {
    %c0_i32 = arith.constant 0 : i32
    %c0_i32_0 = arith.constant 0 : i32
    return %c0_i32, %arg1 : i32, i32
  }
  func.func @transform_3(%arg0: i32, %arg1: i32, %arg2: i32) -> (i32, i32) {
    %c0_i32 = arith.constant 0 : i32
    return %arg0, %arg1 : i32, i32
  }
}

</mosaic_0001>

<bundles_post_ra>
// kernel: tpu_custom_call.1
= control target key start
LH: loop header
LB: loop body
LE: loop exit
PB: predicated region body
PF: predicated region fallthrough
CT: control target
= control target key end

     0   :  { %8 = vsyncpa [#allocation4], 0  ;;  %s400_s0 = inlined_call_operand.hbm [shape: bf16[32,32], index: 0, kind: input, shape index: {}]   ;;  %s401_s1 = inlined_call_operand.hbm [shape: bf16[32,96], index: 1, kind: input, shape index: {}]   ;;  %s402_s2 = inlined_call_operand.vmem [shape: f32[1,96], index: 2, kind: input, shape index: {}]   ;;  %s403_s3 = inlined_call_operand.hbm [shape: bf16[32,96], index: 3, kind: output, shape index: {}]  }
   0x1   :  { %9 = vsyncpa [#allocation7], 0 }
   0x2   :  { %10 = vsyncpa [#allocation5], 0  ;;  %s318_s12 = smov [#allocation3]   ;;  %s246_s16 = scalar_lea.hbm %s400_s0, 256 }
   0x3   :  { %s16_s13 = sshll.u32 %s318_s12, 4  ;;  %p247_p0 = scmp.ne.s32.totalorder %s400_s0, %s246_s16  ;;  %s17_s13 = int_to_ptr.vmem [resolvable:$true] %s16_s13 }
   0x4   :  { %p250_p1 = scmp.lt.u32.totalorder %s246_s16, %s400_s0 }
   0x6   :  { %p252_p2 = pnand %p250_p1, %p247_p0 }
   0x8   :  { %255 = shalt.err (!%p252_p2)
}
   0x9   :  { %s256_s21 = scalar_lea.vmem %s17_s13, 256  ;;  %p261_p4 = scmp.lt.s32.totalorder %s17_s13, %s17_s13 }
   0xa   :  { %p257_p3 = scmp.ne.s32.totalorder %s17_s13, %s256_s21  ;;  %p262_p5 = scmp.lt.s32.totalorder %s256_s21, %s256_s21 }
   0xc   :  { %p263_p6 = por %p262_p5, %p261_p4 }
   0xe   :  { %p264_p7 = pnand %p263_p6, %p257_p3 }
  0x10   :  { %267 = shalt.err (!%p264_p7)
}
  0x11   :  { %s319_s22 = smov 64   ;;  %s320_s23 = smov 4  }
  0x12   :  { %22 = dma.hbm_to_vmem [thread:$0]  %s400_s0, 256, %s17_s13, [#allocation4], %s319_s22, %s319_s22, %s320_s23  }
  0x13   :  { %s321_s26 = smov [#allocation6]   ;;  %s268_s30 = scalar_lea.hbm %s401_s1, 256 }
  0x14   :  { %s28_s27 = sshll.u32 %s321_s26, 4  ;;  %p269_p8 = scmp.ne.s32.totalorder %s401_s1, %s268_s30  ;;  %s29_s27 = int_to_ptr.vmem [resolvable:$true] %s28_s27 }
  0x15   :  { %p272_p9 = scmp.lt.u32.totalorder %s268_s30, %s401_s1 }
  0x17   :  { %p274_p10 = pnand %p272_p9, %p269_p8 }
  0x19   :  { %277 = shalt.err (!%p274_p10)
}
  0x1a   :  { %s278_s8 = scalar_lea.vmem %s29_s27, 256  ;;  %p283_p12 = scmp.lt.s32.totalorder %s29_s27, %s29_s27 }
  0x1b   :  { %p279_p11 = scmp.ne.s32.totalorder %s29_s27, %s278_s8  ;;  %p284_p13 = scmp.lt.s32.totalorder %s278_s8, %s278_s8 }
  0x1d   :  { %p285_p0 = por %p284_p13, %p283_p12 }
  0x1f   :  { %p286_p1 = pnand %p285_p0, %p279_p11 }
  0x21   :  { %289 = shalt.err (!%p286_p1)
}
  0x22   :  { %34 = dma.hbm_to_vmem [thread:$0]  %s401_s1, 256, %s29_s27, [#allocation7], %s319_s22, %s319_s22, %s320_s23  }
  0x23   :  { %312 = dma.done.wait [#allocation4], 256  }
  0x24   :  { %313 = vsyncadd [#allocation4], 4294967040 }
  0x25   :  { %314 = dma.done.wait [#allocation7], 256  }
  0x26   :  { %315 = vsyncadd [#allocation7], 4294967040  ;;  %vm48_vm0 = vcmask 785408   ;;  %v322_v0 = vmov 0.0   ;;  %v242_v1 = vld [vmem:[#allocation6] sm:$0xff]   ;;  %v243_v2 = vld [vmem:[#allocation6 + $0x8] sm:$0xff]  }
  0x27   :  { %51 = vst.msk [vmem:[#allocation2 + $0x10] sm:$0xff] %vm48_vm0, %v322_v0  ;;  %49 = vst.msk [vmem:[#allocation2] sm:$0xff] %vm48_vm0, %v322_v0  ;;  %vm87_vm1 = vcmask 261120   ;;  %228 = vmatprep.subr.bf16.mxu0 %v242_v1  ;;  %v244_v3 = vld [vmem:[#allocation3] sm:$0xff]   ;;  %v245_v4 = vld [vmem:[#allocation3 + $0x8] sm:$0xff]   ;;  %vm186_vm2 = vcmask 781312  }
  0x28   :  { %50 = vst.msk [vmem:[#allocation2 + $0x8] sm:$0xff] %vm48_vm0, %v322_v0  ;;  %52 = vst.msk [vmem:[#allocation2 + $0x18] sm:$0xff] %vm48_vm0, %v322_v0  ;;  %229 = vmatpush3.bf16.msra.mxu0 %v242_v1  ;;  %232 = vmatprep.mubr.msk.bf16.mxu0 %vm87_vm1, %v244_v3  ;;  %v215_v17 = vld [vmem:[%s402_s2] ss:$0 sm:$0xff]  ;;  %s323_s11 = smov [#allocation8]  }
  0x29   :  { %230 = vmatprep.subr.bf16.mxu0 %v243_v2  ;;  %s196_s12 = sshll.u32 %s323_s11, 4  ;;  %s197_s12 = int_to_ptr.vmem [resolvable:$true] %s196_s12 }
  0x2a   :  { %s290_s2 = scalar_lea.vmem %s197_s12, 256  ;;  %p295_p3 = scmp.lt.s32.totalorder %s197_s12, %s197_s12 }
  0x2b   :  { %p291_p2 = scmp.ne.s32.totalorder %s197_s12, %s290_s2  ;;  %p296_p4 = scmp.lt.s32.totalorder %s290_s2, %s290_s2 }
  0x2c   :  { %231 = vmatpush3.bf16.msra.mxu0 %v243_v2 }
  0x2d   :  { %p297_p5 = por %p296_p4, %p295_p3 }
  0x2e   :  { %v55_v5 = vld [vmem:[#allocation2 + $0x10] sm:$0xff]  ;;  %v53_v6 = vld [vmem:[#allocation2] sm:$0xff] }
  0x2f   :  { %233 = vmatmul.mubr.msk.bf16.vlgmr.msra.gmra.mrb[0].mxu0 %vm87_vm1, %v245_v4  ;;  %v56_v8 = vld [vmem:[#allocation2 + $0x18] sm:$0xff]  ;;  %v54_v11 = vld [vmem:[#allocation2 + $0x8] sm:$0xff]  ;;  %p298_p6 = pnand %p297_p5, %p291_p2 }
 0x102   :  { %v234_v7 = vpop.f32.mrb[0].mxu0 }
 0x103   :  { %v145_v9 = vadd.f32 %v234_v7, %v55_v5  ;;  %v128_v10 = vpop.f32.mrb[1].mxu0 }
 0x104   :  { %v143_v12 = vadd.f32 %v128_v10, %v53_v6  ;;  %v235_v13 = vpop.f32.mrb[2].mxu0 }
 0x105   :  { %150 = vst.msk [vmem:[#allocation2 + $0x10] sm:$0xff] %vm48_vm0, %v145_v9  ;;  %v146_v14 = vadd.f32 %v235_v13, %v56_v8  ;;  %v131_v15 = vpop.f32.mrb[3].mxu0 }
 0x106   :  { %148 = vst.msk [vmem:[#allocation2] sm:$0xff] %vm48_vm0, %v143_v12  ;;  %v144_v16 = vadd.f32 %v131_v15, %v54_v11 }
 0x107   :  { %151 = vst.msk [vmem:[#allocation2 + $0x18] sm:$0xff] %vm48_vm0, %v146_v14 }
 0x108   :  { %149 = vst.msk [vmem:[#allocation2 + $0x8] sm:$0xff] %vm48_vm0, %v144_v16 }
 0x10c   :  { %v157_v18 = vld [vmem:[#allocation2 + $0x10] sm:$0xff] }
 0x10d   :  { %v155_v19 = vld [vmem:[#allocation2] sm:$0xff]  ;;  %v168_v20 = vadd.f32 %v215_v17, %v157_v18 }
 0x10e   :  { %v158_v21 = vld [vmem:[#allocation2 + $0x18] sm:$0xff]  ;;  %v166_v22 = vadd.f32 %v215_v17, %v155_v19 }
 0x10f   :  { %v156_v23 = vld [vmem:[#allocation2 + $0x8] sm:$0xff]  ;;  %v169_v24 = vadd.f32 %v215_v17, %v158_v21  ;;  %v222_v25 = vpack.c.bf16 %v168_v20, %v168_v20 }
 0x110   :  { %v167_v26 = vadd.f32 %v215_v17, %v156_v23  ;;  %v220_v27 = vpack.c.bf16 %v166_v22, %v166_v22 }
 0x111   :  { %v223_v28 = vpack.c.bf16 %v169_v24, %v169_v24  ;;  %189 = vst.msk [vmem:[#allocation8 + $0x8] sm:$0xf] %vm186_vm2, %v222_v25 }
 0x112   :  { %v221_v29 = vpack.c.bf16 %v167_v26, %v167_v26  ;;  %187 = vst.msk [vmem:[#allocation8] sm:$0xf] %vm186_vm2, %v220_v27 }
 0x113   :  { %190 = vst.msk [vmem:[#allocation8 + $0xc] sm:$0xf] %vm186_vm2, %v223_v28 }
 0x114   :  { %188 = vst.msk [vmem:[#allocation8 + $0x4] sm:$0xf] %vm186_vm2, %v221_v29 }
 0x115   :  { %301 = shalt.err (!%p298_p6)
}
 0x116   :  { %s302_s15 = scalar_lea.hbm %s403_s3, 256 }
 0x117   :  { %p303_p7 = scmp.ne.s32.totalorder %s403_s3, %s302_s15  ;;  %p306_p8 = scmp.lt.u32.totalorder %s302_s15, %s403_s3 }
 0x119   :  { %p308_p9 = pnand %p306_p8, %p303_p7 }
 0x11b   :  { %311 = shalt.err (!%p308_p9)
}
 0x11c   :  { %202 = dma.vmem_to_hbm [thread:$0]  %s197_s12, 256, %s403_s3, [#allocation5], %s319_s22, %s319_s22, %s320_s23  }
 0x11d   :  { %316 = dma.done.wait [#allocation5], 256  }
 0x11e   :  { %317 = vsyncadd [#allocation5], 4294967040 }
 0x11f   :  { %206 = vsyncpa [#allocation4], 1 }
 0x120   :  { %207 = vsyncpa [#allocation7], 1 }
 0x121   :  { %208 = vsyncpa [#allocation5], 1 }

</bundles_post_ra>
